<compile_context>
chip_gen: v6e
topology: v6e:2x2x1
jax: 0.10.0
libtpu: 0.0.40
codegen_flags: <defaults>
</compile_context>

<pallas_src>
import math

import jax
import jax.numpy as jnp
from jax import lax
from jax.experimental import pallas as pl
from jax.experimental.pallas import tpu as pltpu


# ------------------------------- helpers ------------------------------------ #
def _round_up(x, m):
    return ((x + m - 1) // m) * m


def _largest_divisor_leq(n, cap):
    for t in range(min(cap, n), 0, -1):
        if n % t == 0:
            return t
    return 1


def _pick_tile(dim, cap, align):
    """Pick (tile, padded_dim) for one matmul dim.

    Preference order: full-extent block (always legal under the (8,128) rule,
    no pad copy) -> aligned divisor of dim (no pad copy) -> pad fallback."""
    cap = max(align, (cap // align) * align)
    if dim <= cap:
        return dim, dim
    t = cap
    while t >= align:
        if dim % t == 0:
            return t, dim
        t -= align
    return cap, _round_up(dim, cap)


def _device_config():
    """(tm_cap, tn_cap, tk_cap, vmem_limit_bytes) per TPU generation.
    v5e/v6e have 128 MiB physical VMEM -> bigger tiles & limit; otherwise be
    conservative (v7x has only 64 MiB VMEM)."""
    kind = ""
    try:
        kind = jax.devices()[0].device_kind.lower()
    except Exception:
        pass
    if "v5" in kind or "v6" in kind:
        return 512, 512, 512, 96 * 1024 * 1024
    return 256, 256, 512, 48 * 1024 * 1024


# --------------------------- tiled linear (MXU) ----------------------------- #
def _linear_kernel_accout(x_ref, w_ref, b_ref, o_ref):
    """f32 output: accumulate directly into the resident output block (the
    output BlockSpec ignores k, so the block stays in VMEM across the K axis).
    Saves the tm*tn*4 B scratch + one VMEM copy per (i, j) block."""
    k = pl.program_id(2)

    @pl.when(k == 0)
    def _():
        o_ref[...] = jnp.zeros_like(o_ref)

    o_ref[...] += jnp.dot(x_ref[...], w_ref[...],
                          preferred_element_type=jnp.float32)

    @pl.when(k == pl.num_programs(2) - 1)
    def _():
        o_ref[...] += b_ref[...].astype(jnp.float32)


def _linear_kernel_scratch(x_ref, w_ref, b_ref, o_ref, acc_ref):
    """Narrow output dtype (e.g. bf16): f32 VMEM accumulator, cast on flush."""
    k = pl.program_id(2)

    @pl.when(k == 0)
    def _():
        acc_ref[...] = jnp.zeros_like(acc_ref)

    acc_ref[...] += jnp.dot(x_ref[...], w_ref[...],
                            preferred_element_type=jnp.float32)

    @pl.when(k == pl.num_programs(2) - 1)
    def _():
        o_ref[...] = (acc_ref[...] + b_ref[...].astype(jnp.float32)
                      ).astype(o_ref.dtype)


def linear_pallas(x2d, w, b, *, out_dtype=None, operand_dtype=None):
    """x2d: (M, K), w: (K, N), b: (N,) -> (M, N) = x @ w + b.

    operand_dtype (e.g. bf16) is the MXU operand type; accumulation is f32."""
    M, K = x2d.shape
    N = w.shape[1]
    out_dtype = jnp.dtype(out_dtype) if out_dtype is not None else x2d.dtype

    tm_cap, tn_cap, tk_cap, vmem_limit = _device_config()
    tm, Mp = _pick_tile(M, tm_cap, 8)      # M is a sublane dim -> 8-alignment
    tn, Np = _pick_tile(N, tn_cap, 128)    # N, K are lane dims -> 128-alignment
    tk, Kp = _pick_tile(K, tk_cap, 128)

    if operand_dtype is not None:
        operand_dtype = jnp.dtype(operand_dtype)
        if x2d.dtype != operand_dtype:
            x2d = x2d.astype(operand_dtype)
        if w.dtype != operand_dtype:
            w = w.astype(operand_dtype)

    xp = x2d if (Mp, Kp) == (M, K) else jnp.pad(x2d, ((0, Mp - M), (0, Kp - K)))
    wp = w if (Kp, Np) == (K, N) else jnp.pad(w, ((0, Kp - K), (0, Np - N)))
    bp = (b if Np == N else jnp.pad(b, ((0, Np - N),))).reshape(1, Np)

    f32_out = out_dtype == jnp.dtype(jnp.float32)
    kernel = _linear_kernel_accout if f32_out else _linear_kernel_scratch
    scratch = [] if f32_out else [pltpu.VMEM((tm, tn), jnp.float32)]

    out = pl.pallas_call(
        kernel,
        out_shape=jax.ShapeDtypeStruct((Mp, Np), out_dtype),
        grid=(Mp // tm, Np // tn, Kp // tk),
        in_specs=[
            pl.BlockSpec((tm, tk), lambda i, j, k: (i, k)),
            pl.BlockSpec((tk, tn), lambda i, j, k: (k, j)),
            pl.BlockSpec((1, tn), lambda i, j, k: (0, j)),
        ],
        out_specs=pl.BlockSpec((tm, tn), lambda i, j, k: (i, j)),
        scratch_shapes=scratch,
        compiler_params=pltpu.CompilerParams(
            dimension_semantics=("parallel", "parallel", "arbitrary"),
            vmem_limit_bytes=vmem_limit),
    )(xp, wp, bp)
    return out if (Mp, Np) == (M, N) else out[:M, :N]


# --------------------- depthwise 3x3 conv + exact GELU ---------------------- #
def _dwconv_gelu_kernel(x_ref, top_ref, bot_ref, w_ref, b_ref, o_ref):
    # x_ref   : (1, th, W, cb)  row tile of the image (channel block cb)
    # top_ref : (1, 1, W, cb)   row (r*th - 1), clamped; masked to 0 when r == 0
    # bot_ref : (1, 1, W, cb)   row (r*th + th), clamped; masked to 0 when last
    # w_ref   : (9, cb), b_ref : (1, cb)
    # o_ref   : (1, th, W, cb) = GELU(depthwise_conv3x3(x) + b)   (exact erf)
    _, th, W, cb = x_ref.shape
    r = pl.program_id(2)
    n_r = pl.num_programs(2)

    x = x_ref[...].astype(jnp.float32)
    top = top_ref[...].astype(jnp.float32)
    bot = bot_ref[...].astype(jnp.float32)
    top = jnp.where(r == 0, 0.0, top)          # image border -> zero halo row
    bot = jnp.where(r == n_r - 1, 0.0, bot)

    xr = jnp.concatenate([top, x, bot], axis=1)            # (1, th+2, W,   cb)
    xp = jnp.pad(xr, ((0, 0), (0, 0), (1, 1), (0, 0)))     # (1, th+2, W+2, cb)

    w = w_ref[...].astype(jnp.float32)        # (9, cb), loaded once (hoisted)
    bias = b_ref[...].astype(jnp.float32)     # (1, cb)

    acc = jnp.zeros((1, th, W, cb), jnp.float32)
    # TODO(synk): dx=1,2 taps are sublane-misaligned slices (VPU relayout); an
    # XLU pltpu.roll per dy + edge mask would move the shift off the VALU slot.
    for dy in range(3):
        for dx in range(3):
            acc = acc + xp[:, dy:dy + th, dx:dx + W, :] * w[dy * 3 + dx]
    acc = acc + bias
    out = 0.5 * acc * (1.0 + lax.erf(acc * (1.0 / math.sqrt(2.0))))
    o_ref[...] = out.astype(o_ref.dtype)


def dwconv_gelu_pallas(x_nhwc, w_dw, b_dw, *, out_dtype=None, cb=128, th_cap=32):
    """x_nhwc: (B, H, W, C); w_dw: (3, 3, C); b_dw: (C,).
    Depthwise 3x3, stride 1, pad 1, + bias, then exact GELU.

    Row-tiled: grid=(B, C/cb, H/th).  The 1-px row halo comes from two extra
    1-row BlockSpec inputs on the same array (clamped index_map, masked at the
    image border) -- no wrapper-side HBM pad copy."""
    B, H, W, C = x_nhwc.shape
    out_dtype = jnp.dtype(out_dtype) if out_dtype is not None else x_nhwc.dtype

    Cp = _round_up(C, 128)
    if Cp != C:  # lane-dense 128-channel blocks (zero channels stay zero)
        x_nhwc = jnp.pad(x_nhwc, ((0, 0), (0, 0), (0, 0), (0, Cp - C)))
        w_dw = jnp.pad(w_dw, ((0, 0), (0, 0), (0, Cp - C)))
        b_dw = jnp.pad(b_dw, ((0, Cp - C),))
    cb = min(cb, Cp)
    th = _largest_divisor_leq(H, th_cap)
    n_r = H // th
    n_c = Cp // cb
    w9 = w_dw.reshape(9, Cp)
    b2d = b_dw.reshape(1, Cp)
    _, _, _, vmem_limit = _device_config()

    out = pl.pallas_call(
        _dwconv_gelu_kernel,
        out_shape=jax.ShapeDtypeStruct((B, H, W, Cp), out_dtype),
        grid=(B, n_c, n_r),
        in_specs=[
            # main row tile (block-indexed rows)
            pl.BlockSpec((1, th, W, cb), lambda b, c, r: (b, r, 0, c)),
            # top halo row: block size 1 along rows -> index map is the row id
            pl.BlockSpec((1, 1, W, cb),
                         lambda b, c, r: (b, jnp.maximum(r * th - 1, 0), 0, c)),
            # bottom halo row
            pl.BlockSpec((1, 1, W, cb),
                         lambda b, c, r: (b, jnp.minimum(r * th + th, H - 1), 0, c)),
            pl.BlockSpec((9, cb), lambda b, c, r: (0, c)),
            pl.BlockSpec((1, cb), lambda b, c, r: (0, c)),
        ],
        out_specs=pl.BlockSpec((1, th, W, cb), lambda b, c, r: (b, r, 0, c)),
        compiler_params=pltpu.CompilerParams(
            dimension_semantics=("parallel", "parallel", "parallel"),
            vmem_limit_bytes=vmem_limit),
    )(x_nhwc, x_nhwc, x_nhwc, w9, b2d)
    return out[..., :C] if Cp != C else out


# ----------------------------- full forward --------------------------------- #
def mlp_forward(x, H, W, params, *, compute_dtype=jnp.bfloat16):
    """x: (B, N, C_in) with N = H*W. Returns (B, N, C_out) in float32.
    Matches torch Mlp.forward with drop=0.0 (dropout is identity).
    compute_dtype is the MXU-operand / inter-stage activation dtype."""
    B, N, Cin = x.shape
    w1, b1, wdw, bdw, w2, b2 = (params[k] for k in
                                ("w1", "b1", "wdw", "bdw", "w2", "b2"))
    hidden = w1.shape[1]
    act_dtype = jnp.dtype(compute_dtype)

    # fc1 (bf16 operands, f32 accumulation; hidden activation stored in act_dtype)
    h = linear_pallas(x.reshape(B * N, Cin), w1, b1,
                      out_dtype=act_dtype, operand_dtype=act_dtype)
    # DWConv + GELU (PyTorch is NCHW; here channels-last NHWC, same math)
    h = dwconv_gelu_pallas(h.reshape(B, H, W, hidden), wdw, bdw,
                           out_dtype=act_dtype)
    # fc2 (accumulates in f32 and emits f32, matching the module output dtype)
    out = linear_pallas(h.reshape(B * N, hidden), w2, b2,
                        out_dtype=jnp.float32, operand_dtype=act_dtype)
    return out.reshape(B, N, w2.shape[1])
    # nn.Dropout(0.0) is identity, so no kernel is needed.


# ----------------------------- parameter init ------------------------------- #
def init_params(key, in_features, hidden_features, out_features):
    k1, k2, k3 = jax.random.split(key, 3)
    # trunc_normal(std=0.02) for Linear weights (stored as (in, out) so the
    # kernel computes x @ W + b, equivalent to torch's x @ W.T, W:(out,in)).
    w1 = 0.02 * jax.random.truncated_normal(
        k1, -2.0, 2.0, (in_features, hidden_features), jnp.float32)
    b1 = jnp.zeros((hidden_features,), jnp.float32)
    # depthwise conv: fan_out = 3*3*dim/dim = 9
    wdw = jax.random.normal(k2, (3, 3, hidden_features), jnp.float32) * math.sqrt(2.0 / 9.0)
    bdw = jnp.zeros((hidden_features,), jnp.float32)
    w2 = 0.02 * jax.random.truncated_normal(
        k3, -2.0, 2.0, (hidden_features, out_features), jnp.float32)
    b2 = jnp.zeros((out_features,), jnp.float32)
    return dict(w1=w1, b1=b1, wdw=wdw, bdw=bdw, w2=w2, b2=b2)


# ----------------------------- reference (pure JAX) -------------------------- #
def mlp_reference(x, H, W, params):
    B, N, Cin = x.shape
    h = x @ params["w1"] + params["b1"]
    hidden = h.shape[-1]
    h = h.reshape(B, H, W, hidden)
    hp = jnp.pad(h, ((0, 0), (1, 1), (1, 1), (0, 0)))
    acc = jnp.zeros_like(h)
    for dy in range(3):
        for dx in range(3):
            acc = acc + hp[:, dy:dy + H, dx:dx + W, :] * params["wdw"][dy, dx, :]
    acc = acc + params["bdw"]
    acc = 0.5 * acc * (1.0 + lax.erf(acc / math.sqrt(2.0)))
    acc = acc.reshape(B, N, hidden)
    return acc @ params["w2"] + params["b2"]


# ----------------------------- main ------------------------------------------ #
if __name__ == "__main__":
    key = jax.random.PRNGKey(0)
    kx, kp = jax.random.split(key)

    B, H, W = 2, 8, 8
    N = H * W
    in_features, hidden_features, out_features = 16, 32, 16

    x = jax.random.normal(kx, (B, N, in_features), jnp.float32)
    params = init_params(kp, in_features, hidden_features, out_features)

    ref = mlp_reference(x, H, W, params)

    # 1) f32 compute path: tight tolerance vs. pure-JAX reference.
    out_f32 = jax.block_until_ready(
        mlp_forward(x, H, W, params, compute_dtype=jnp.float32))
    assert out_f32.shape == (B, N, out_features)
    err_f32 = float(jnp.max(jnp.abs(out_f32 - ref)))
    assert jnp.allclose(out_f32, ref, atol=1e-4, rtol=1e-4), \
        "f32 path max err %g" % err_f32

    # 2) default bf16-operand path (MXU-native): looser tolerance.
    out_bf = jax.block_until_ready(mlp_forward(x, H, W, params))
    assert out_bf.shape == (B, N, out_features)
    err_bf = float(jnp.max(jnp.abs(out_bf - ref)))
    assert jnp.allclose(out_bf, ref, atol=2e-2, rtol=2e-2), \
        "bf16 path max err %g" % err_bf

    print("KERNEL_OK")
</pallas_src>

<mosaic_0001>
module attributes {stable_mosaic.version = 11 : i64} {
  func.func @_linear_kernel_accout(%arg0: i32, %arg1: i32, %arg2: i32, %arg3: memref<128x16xf32, #tpu.memory_space<vmem>>, %arg4: memref<16x32xf32, #tpu.memory_space<vmem>>, %arg5: memref<1x32xf32, #tpu.memory_space<vmem>>, %arg6: memref<128x32xf32, #tpu.memory_space<vmem>>) attributes {dimension_semantics = [#tpu.dimension_semantics<parallel>, #tpu.dimension_semantics<parallel>, #tpu.dimension_semantics<arbitrary>], iteration_bounds = array<i64: 1, 1, 1>, scalar_prefetch = 0 : i64, scratch_operands = 0 : i64, tpu.core_type = #tpu.core_type<tc>, window_params = [{transform_indices = @transform_0, window_bounds = array<i64: 128, 16>}, {transform_indices = @transform_1, window_bounds = array<i64: 16, 32>}, {transform_indices = @transform_2, window_bounds = array<i64: 1, 32>}, {transform_indices = @transform_3, window_bounds = array<i64: 128, 32>}]} {
    %c0_i32 = arith.constant 0 : i32
    %0 = arith.cmpi eq, %arg2, %c0_i32 : i32
    %1 = arith.extui %0 : i1 to i32
    %c0_i32_0 = arith.constant 0 : i32
    %2 = arith.cmpi ne, %1, %c0_i32_0 : i32
    scf.if %2 {
      %cst_10 = arith.constant 0.000000e+00 : f32
      %12 = vector.broadcast %cst_10 : f32 to vector<128x32xf32>
      %c0_11 = arith.constant 0 : index
      %c0_12 = arith.constant 0 : index
      %13 = vector.load %arg6[%c0_11, %c0_12] : memref<128x32xf32, #tpu.memory_space<vmem>>, vector<128x32xf32>
      tpu.vector_store %arg6[%c0_11, %c0_12], %12 {strides = array<i32>} : memref<128x32xf32, #tpu.memory_space<vmem>>, vector<128x32xf32>,
    } else {
    }
    %c0 = arith.constant 0 : index
    %c0_1 = arith.constant 0 : index
    %3 = vector.load %arg6[%c0, %c0_1] : memref<128x32xf32, #tpu.memory_space<vmem>>, vector<128x32xf32>
    %c0_2 = arith.constant 0 : index
    %c0_3 = arith.constant 0 : index
    %4 = vector.load %arg3[%c0_2, %c0_3] : memref<128x16xf32, #tpu.memory_space<vmem>>, vector<128x16xf32>
    %c0_4 = arith.constant 0 : index
    %c0_5 = arith.constant 0 : index
    %5 = vector.load %arg4[%c0_4, %c0_5] : memref<16x32xf32, #tpu.memory_space<vmem>>, vector<16x32xf32>
    %cst = arith.constant dense<0.000000e+00> : vector<128x32xf32>
    %6 = tpu.matmul %4, %5, %cst {dimension_numbers = #tpu.dot_dimension_numbers<[1], [0], [0], [1], [0, 0, 1, 1], [], []>} : vector<128x16xf32>, vector<16x32xf32>, vector<128x32xf32> -> vector<128x32xf32>
    %7 = arith.addf %3, %6 : vector<128x32xf32>
    %c0_6 = arith.constant 0 : index
    %c0_7 = arith.constant 0 : index
    %8 = vector.load %arg6[%c0_6, %c0_7] : memref<128x32xf32, #tpu.memory_space<vmem>>, vector<128x32xf32>
    tpu.vector_store %arg6[%c0_6, %c0_7], %7 {strides = array<i32>} : memref<128x32xf32, #tpu.memory_space<vmem>>, vector<128x32xf32>,
    %c0_i32_8 = arith.constant 0 : i32
    %9 = arith.cmpi eq, %arg2, %c0_i32_8 : i32
    %10 = arith.extui %9 : i1 to i32
    %c0_i32_9 = arith.constant 0 : i32
    %11 = arith.cmpi ne, %10, %c0_i32_9 : i32
    scf.if %11 {
      %c0_10 = arith.constant 0 : index
      %c0_11 = arith.constant 0 : index
      %12 = vector.load %arg6[%c0_10, %c0_11] : memref<128x32xf32, #tpu.memory_space<vmem>>, vector<128x32xf32>
      %c0_12 = arith.constant 0 : index
      %c0_13 = arith.constant 0 : index
      %13 = vector.load %arg5[%c0_12, %c0_13] : memref<1x32xf32, #tpu.memory_space<vmem>>, vector<1x32xf32>
      %14 = vector.broadcast %13 : vector<1x32xf32> to vector<128x32xf32>
      %15 = arith.addf %12, %14 : vector<128x32xf32>
      %c0_14 = arith.constant 0 : index
      %c0_15 = arith.constant 0 : index
      %16 = vector.load %arg6[%c0_14, %c0_15] : memref<128x32xf32, #tpu.memory_space<vmem>>, vector<128x32xf32>
      tpu.vector_store %arg6[%c0_14, %c0_15], %15 {strides = array<i32>} : memref<128x32xf32, #tpu.memory_space<vmem>>, vector<128x32xf32>,
    } else {
    }
    return
  }
  func.func @transform_0(%arg0: i32, %arg1: i32, %arg2: i32) -> (i32, i32) {
    %c0_i32 = arith.constant 0 : i32
    return %arg0, %arg2 : i32, i32
  }
  func.func @transform_1(%arg0: i32, %arg1: i32, %arg2: i32) -> (i32, i32) {
    %c0_i32 = arith.constant 0 : i32
    return %arg2, %arg1 : i32, i32
  }
  func.func @transform_2(%arg0: i32, %arg1: i32, %arg2: i32) -> (i32, i32) {
    %c0_i32 = arith.constant 0 : i32
    %c0_i32_0 = arith.constant 0 : i32
    return %c0_i32, %arg1 : i32, i32
  }
  func.func @transform_3(%arg0: i32, %arg1: i32, %arg2: i32) -> (i32, i32) {
    %c0_i32 = arith.constant 0 : i32
    return %arg0, %arg1 : i32, i32
  }
}

</mosaic_0001>

<bundles_post_ra>
// kernel: tpu_custom_call.1
= control target key start
LH: loop header
LB: loop body
LE: loop exit
PB: predicated region body
PF: predicated region fallthrough
CT: control target
= control target key end

     0   :  { %vm18_vm0 = vcmask 261120   ;;  %v426_v2 = vmov 0.0   ;;  %vm69_vm1 = vcmask 130048   ;;  %s826_s1 = inlined_call_operand.vmem [shape: f32[16,32], index: 1, kind: input, shape index: {}]   ;;  %s827_s0 = inlined_call_operand.vmem [shape: f32[128,16], index: 0, kind: input, shape index: {}]   ;;  %s828_s3 = inlined_call_operand.vmem [shape: f32[128,32], index: 3, kind: output, shape index: {}]   ;;  %s829_s2 = inlined_call_operand.vmem [shape: f32[1,32], index: 2, kind: input, shape index: {}]  }
   0x1   :  { %v68_v0 = vld [vmem:[%s826_s1 + $0x8] sm:$0xff]  ;;  %v67_v1 = vld [vmem:[%s826_s1] sm:$0xff]  ;;  %20 = vst.msk [vmem:[%s828_s3 + $0x8] sm:$0xff] %vm18_vm0, %v426_v2  ;;  %19 = vst.msk [vmem:[%s828_s3] sm:$0xff] %vm18_vm0, %v426_v2 }
   0x2   :  { %21 = vst.msk [vmem:[%s828_s3 + $0x10] sm:$0xff] %vm18_vm0, %v426_v2  ;;  %22 = vst.msk [vmem:[%s828_s3 + $0x18] sm:$0xff] %vm18_vm0, %v426_v2  ;;  %393 = vmatprep.subr.mxu0 %v68_v0  ;;  %421 = vmatprep.subr.mxu1 %v68_v0  ;;  %v51_v3 = vld [vmem:[%s827_s0] sm:$0xff]  ;;  %v52_v5 = vld [vmem:[%s827_s0 + $0x8] sm:$0xff] }
   0x3   :  { %23 = vst.msk [vmem:[%s828_s3 + $0x20] sm:$0xff] %vm18_vm0, %v426_v2  ;;  %24 = vst.msk [vmem:[%s828_s3 + $0x28] sm:$0xff] %vm18_vm0, %v426_v2  ;;  %394 = vmatpush3.msra.mxu0 %v68_v0  ;;  %423 = vmatpush3.msra.mxu1 %v68_v0  ;;  %v59_v4 = vld [vmem:[%s827_s0 + $0x40] sm:$0xff]  ;;  %v60_v6 = vld [vmem:[%s827_s0 + $0x48] sm:$0xff] }
   0x4   :  { %25 = vst.msk [vmem:[%s828_s3 + $0x30] sm:$0xff] %vm18_vm0, %v426_v2  ;;  %26 = vst.msk [vmem:[%s828_s3 + $0x38] sm:$0xff] %vm18_vm0, %v426_v2  ;;  %395 = vmatprep.subr.mxu0 %v67_v1  ;;  %422 = vmatprep.subr.mxu1 %v67_v1  ;;  %v53_v7 = vld [vmem:[%s827_s0 + $0x10] sm:$0xff]  ;;  %v54_v9 = vld [vmem:[%s827_s0 + $0x18] sm:$0xff] }
   0x5   :  { %27 = vst.msk [vmem:[%s828_s3 + $0x40] sm:$0xff] %vm18_vm0, %v426_v2  ;;  %28 = vst.msk [vmem:[%s828_s3 + $0x48] sm:$0xff] %vm18_vm0, %v426_v2  ;;  %396 = vmatpush3.msra.mxu0 %v67_v1  ;;  %424 = vmatpush3.msra.mxu1 %v67_v1  ;;  %v61_v8 = vld [vmem:[%s827_s0 + $0x50] sm:$0xff]  ;;  %v62_v10 = vld [vmem:[%s827_s0 + $0x58] sm:$0xff] }
   0x6   :  { %29 = vst.msk [vmem:[%s828_s3 + $0x50] sm:$0xff] %vm18_vm0, %v426_v2  ;;  %30 = vst.msk [vmem:[%s828_s3 + $0x58] sm:$0xff] %vm18_vm0, %v426_v2  ;;  %397 = vmatprep.mubr.msk.f32.mxu0 %vm69_vm1, %v51_v3  ;;  %409 = vmatprep.mubr.msk.f32.mxu1 %vm69_vm1, %v59_v4  ;;  %v55_v11 = vld [vmem:[%s827_s0 + $0x20] sm:$0xff]  ;;  %v56_v13 = vld [vmem:[%s827_s0 + $0x28] sm:$0xff] }
   0x7   :  { %31 = vst.msk [vmem:[%s828_s3 + $0x60] sm:$0xff] %vm18_vm0, %v426_v2  ;;  %32 = vst.msk [vmem:[%s828_s3 + $0x68] sm:$0xff] %vm18_vm0, %v426_v2  ;;  %398 = vmatmul.mubr.msk.f32.vlgmr.msra.gmra.mxu0 %vm69_vm1, %v52_v5  ;;  %410 = vmatmul.mubr.msk.f32.vlgmr.msra.gmra.mxu1 %vm69_vm1, %v60_v6  ;;  %v63_v12 = vld [vmem:[%s827_s0 + $0x60] sm:$0xff]  ;;  %v64_v14 = vld [vmem:[%s827_s0 + $0x68] sm:$0xff] }
   0x8   :  { %33 = vst.msk [vmem:[%s828_s3 + $0x70] sm:$0xff] %vm18_vm0, %v426_v2  ;;  %34 = vst.msk [vmem:[%s828_s3 + $0x78] sm:$0xff] %vm18_vm0, %v426_v2  ;;  %400 = vmatprep.mubr.msk.f32.mxu0 %vm69_vm1, %v53_v7  ;;  %412 = vmatprep.mubr.msk.f32.mxu1 %vm69_vm1, %v61_v8  ;;  %v57_v15 = vld [vmem:[%s827_s0 + $0x30] sm:$0xff]  ;;  %v58_v17 = vld [vmem:[%s827_s0 + $0x38] sm:$0xff] }
   0x9   :  { %v65_v16 = vld [vmem:[%s827_s0 + $0x70] sm:$0xff]  ;;  %v66_v18 = vld [vmem:[%s827_s0 + $0x78] sm:$0xff]  ;;  %v36_v19 = vld [vmem:[%s828_s3 + $0x8] sm:$0xff] }
   0xa   :  { %v35_v23 = vld [vmem:[%s828_s3] sm:$0xff]  ;;  %v38_v29 = vld [vmem:[%s828_s3 + $0x18] sm:$0xff]  ;;  %v37_v35 = vld [vmem:[%s828_s3 + $0x10] sm:$0xff] }
   0xb   :  { %401 = vmatmul.mubr.msk.f32.gmra.mxu0 %vm69_vm1, %v54_v9  ;;  %413 = vmatmul.mubr.msk.f32.gmra.mxu1 %vm69_vm1, %v62_v10  ;;  %v40_v41 = vld [vmem:[%s828_s3 + $0x28] sm:$0xff]  ;;  %v638_v45 = vld [vmem:[%s829_s2] ss:$0 sm:$0xff]  ;;  %v42_v52 = vld [vmem:[%s828_s3 + $0x38] sm:$0xff] }
   0xc   :  { %403 = vmatprep.mubr.msk.f32.mxu0 %vm69_vm1, %v55_v11  ;;  %415 = vmatprep.mubr.msk.f32.mxu1 %vm69_vm1, %v63_v12  ;;  %v44_v20 = vld [vmem:[%s828_s3 + $0x48] sm:$0xff]  ;;  %v43_v24 = vld [vmem:[%s828_s3 + $0x40] sm:$0xff]  ;;  %v41_v62 = vld [vmem:[%s828_s3 + $0x30] sm:$0xff] }
   0xd   :  { %v46_v30 = vld [vmem:[%s828_s3 + $0x58] sm:$0xff]  ;;  %v45_v36 = vld [vmem:[%s828_s3 + $0x50] sm:$0xff]  ;;  %v39_v48 = vld [vmem:[%s828_s3 + $0x20] sm:$0xff] }
   0xe   :  { %v48_v42 = vld [vmem:[%s828_s3 + $0x68] sm:$0xff]  ;;  %v47_v49 = vld [vmem:[%s828_s3 + $0x60] sm:$0xff] }
   0xf   :  { %404 = vmatmul.mubr.msk.f32.gmra.mxu0 %vm69_vm1, %v56_v13  ;;  %416 = vmatmul.mubr.msk.f32.gmra.mxu1 %vm69_vm1, %v64_v14  ;;  %v50_v57 = vld [vmem:[%s828_s3 + $0x78] sm:$0xff]  ;;  %v49_v3 = vld [vmem:[%s828_s3 + $0x70] sm:$0xff] }
  0x10   :  { %406 = vmatprep.mubr.msk.f32.mxu0 %vm69_vm1, %v57_v15  ;;  %418 = vmatprep.mubr.msk.f32.mxu1 %vm69_vm1, %v65_v16 }
  0x13   :  { %407 = vmatmul.mubr.msk.f32.gmra.mxu0 %vm69_vm1, %v58_v17  ;;  %419 = vmatmul.mubr.msk.f32.gmra.mxu1 %vm69_vm1, %v66_v18 }
  0xc7   :  { %v399_v21 = vpop.f32.mrf.mxu0  ;;  %v411_v22 = vpop.f32.mrf.mxu1 }
  0xc8   :  { %v264_v25 = vadd.f32 %v399_v21, %v36_v19  ;;  %v272_v26 = vadd.f32 %v411_v22, %v44_v20 }
  0xc9   :  { %v184_v27 = vpop.f32.mrf.mxu0  ;;  %v224_v28 = vpop.f32.mrf.mxu1 }
  0xca   :  { %281 = vst.msk [vmem:[%s828_s3 + $0x8] sm:$0xff] %vm18_vm0, %v264_v25  ;;  %289 = vst.msk [vmem:[%s828_s3 + $0x48] sm:$0xff] %vm18_vm0, %v272_v26  ;;  %v263_v31 = vadd.f32 %v184_v27, %v35_v23  ;;  %v271_v32 = vadd.f32 %v224_v28, %v43_v24 }
  0xcb   :  { %v402_v33 = vpop.f32.mrf.mxu0  ;;  %v414_v34 = vpop.f32.mrf.mxu1 }
  0xcc   :  { %280 = vst.msk [vmem:[%s828_s3] sm:$0xff] %vm18_vm0, %v263_v31  ;;  %288 = vst.msk [vmem:[%s828_s3 + $0x40] sm:$0xff] %vm18_vm0, %v271_v32  ;;  %v266_v37 = vadd.f32 %v402_v33, %v38_v29  ;;  %v274_v38 = vadd.f32 %v414_v34, %v46_v30 }
  0xcd   :  { %v194_v39 = vpop.f32.mrf.mxu0  ;;  %v234_v40 = vpop.f32.mrf.mxu1 }
  0xce   :  { %283 = vst.msk [vmem:[%s828_s3 + $0x18] sm:$0xff] %vm18_vm0, %v266_v37  ;;  %291 = vst.msk [vmem:[%s828_s3 + $0x58] sm:$0xff] %vm18_vm0, %v274_v38  ;;  %v265_v43 = vadd.f32 %v194_v39, %v37_v35  ;;  %v273_v44 = vadd.f32 %v234_v40, %v45_v36 }
  0xcf   :  { %v405_v46 = vpop.f32.mrf.mxu0  ;;  %v417_v47 = vpop.f32.mrf.mxu1 }
  0xd0   :  { %282 = vst.msk [vmem:[%s828_s3 + $0x10] sm:$0xff] %vm18_vm0, %v265_v43  ;;  %290 = vst.msk [vmem:[%s828_s3 + $0x50] sm:$0xff] %vm18_vm0, %v273_v44  ;;  %v268_v50 = vadd.f32 %v405_v46, %v40_v41  ;;  %v276_v51 = vadd.f32 %v417_v47, %v48_v42 }
  0xd1   :  { %v300_v53 = vld [vmem:[%s828_s3 + $0x8] sm:$0xff]  ;;  %v204_v55 = vpop.f32.mrf.mxu0  ;;  %v244_v56 = vpop.f32.mrf.mxu1 }
  0xd2   :  { %v308_v54 = vld [vmem:[%s828_s3 + $0x48] sm:$0xff]  ;;  %v323_v58 = vadd.f32 %v638_v45, %v300_v53  ;;  %285 = vst.msk [vmem:[%s828_s3 + $0x28] sm:$0xff] %vm18_vm0, %v268_v50  ;;  %293 = vst.msk [vmem:[%s828_s3 + $0x68] sm:$0xff] %vm18_vm0, %v276_v51  ;;  %v267_v60 = vadd.f32 %v204_v55, %v39_v48  ;;  %v275_v61 = vadd.f32 %v244_v56, %v47_v49 }
  0xd3   :  { %v331_v59 = vadd.f32 %v638_v45, %v308_v54  ;;  %v299_v63 = vld [vmem:[%s828_s3] sm:$0xff]  ;;  %v408_v1 = vpop.f32.mrf.mxu0  ;;  %v420_v2 = vpop.f32.mrf.mxu1 }
  0xd4   :  { %v307_v0 = vld [vmem:[%s828_s3 + $0x40] sm:$0xff]  ;;  %339 = vst.msk [vmem:[%s828_s3 + $0x8] sm:$0xff] %vm18_vm0, %v323_v58  ;;  %v322_v4 = vadd.f32 %v638_v45, %v299_v63  ;;  %284 = vst.msk [vmem:[%s828_s3 + $0x20] sm:$0xff] %vm18_vm0, %v267_v60  ;;  %v270_v6 = vadd.f32 %v408_v1, %v42_v52  ;;  %v278_v7 = vadd.f32 %v420_v2, %v50_v57 }
  0xd5   :  { %347 = vst.msk [vmem:[%s828_s3 + $0x48] sm:$0xff] %vm18_vm0, %v331_v59  ;;  %v330_v5 = vadd.f32 %v638_v45, %v307_v0  ;;  %292 = vst.msk [vmem:[%s828_s3 + $0x60] sm:$0xff] %vm18_vm0, %v275_v61  ;;  %v302_v8 = vld [vmem:[%s828_s3 + $0x18] sm:$0xff]  ;;  %v214_v10 = vpop.f32.mrf.mxu0  ;;  %v254_v11 = vpop.f32.mrf.mxu1 }
  0xd6   :  { %v310_v9 = vld [vmem:[%s828_s3 + $0x58] sm:$0xff]  ;;  %338 = vst.msk [vmem:[%s828_s3] sm:$0xff] %vm18_vm0, %v322_v4  ;;  %v325_v12 = vadd.f32 %v638_v45, %v302_v8  ;;  %287 = vst.msk [vmem:[%s828_s3 + $0x38] sm:$0xff] %vm18_vm0, %v270_v6  ;;  %v269_v14 = vadd.f32 %v214_v10, %v41_v62  ;;  %v277_v15 = vadd.f32 %v254_v11, %v49_v3 }
  0xd7   :  { %346 = vst.msk [vmem:[%s828_s3 + $0x40] sm:$0xff] %vm18_vm0, %v330_v5  ;;  %v333_v13 = vadd.f32 %v638_v45, %v310_v9  ;;  %295 = vst.msk [vmem:[%s828_s3 + $0x78] sm:$0xff] %vm18_vm0, %v278_v7  ;;  %v301_v16 = vld [vmem:[%s828_s3 + $0x10] sm:$0xff] }
  0xd8   :  { %v309_v17 = vld [vmem:[%s828_s3 + $0x50] sm:$0xff]  ;;  %341 = vst.msk [vmem:[%s828_s3 + $0x18] sm:$0xff] %vm18_vm0, %v325_v12  ;;  %v324_v18 = vadd.f32 %v638_v45, %v301_v16  ;;  %286 = vst.msk [vmem:[%s828_s3 + $0x30] sm:$0xff] %vm18_vm0, %v269_v14 }
  0xd9   :  { %349 = vst.msk [vmem:[%s828_s3 + $0x58] sm:$0xff] %vm18_vm0, %v333_v13  ;;  %v332_v19 = vadd.f32 %v638_v45, %v309_v17  ;;  %294 = vst.msk [vmem:[%s828_s3 + $0x70] sm:$0xff] %vm18_vm0, %v277_v15  ;;  %v304_v20 = vld [vmem:[%s828_s3 + $0x28] sm:$0xff] }
  0xda   :  { %v312_v21 = vld [vmem:[%s828_s3 + $0x68] sm:$0xff]  ;;  %340 = vst.msk [vmem:[%s828_s3 + $0x10] sm:$0xff] %vm18_vm0, %v324_v18  ;;  %v327_v22 = vadd.f32 %v638_v45, %v304_v20 }
  0xdb   :  { %348 = vst.msk [vmem:[%s828_s3 + $0x50] sm:$0xff] %vm18_vm0, %v332_v19  ;;  %v335_v23 = vadd.f32 %v638_v45, %v312_v21  ;;  %v303_v24 = vld [vmem:[%s828_s3 + $0x20] sm:$0xff] }
  0xdc   :  { %v311_v25 = vld [vmem:[%s828_s3 + $0x60] sm:$0xff]  ;;  %343 = vst.msk [vmem:[%s828_s3 + $0x28] sm:$0xff] %vm18_vm0, %v327_v22  ;;  %v326_v26 = vadd.f32 %v638_v45, %v303_v24 }
  0xdd   :  { %351 = vst.msk [vmem:[%s828_s3 + $0x68] sm:$0xff] %vm18_vm0, %v335_v23  ;;  %v334_v27 = vadd.f32 %v638_v45, %v311_v25  ;;  %v306_v28 = vld [vmem:[%s828_s3 + $0x38] sm:$0xff] }
  0xde   :  { %v314_v29 = vld [vmem:[%s828_s3 + $0x78] sm:$0xff]  ;;  %342 = vst.msk [vmem:[%s828_s3 + $0x20] sm:$0xff] %vm18_vm0, %v326_v26  ;;  %v329_v30 = vadd.f32 %v638_v45, %v306_v28 }
  0xdf   :  { %350 = vst.msk [vmem:[%s828_s3 + $0x60] sm:$0xff] %vm18_vm0, %v334_v27  ;;  %v337_v31 = vadd.f32 %v638_v45, %v314_v29  ;;  %v305_v32 = vld [vmem:[%s828_s3 + $0x30] sm:$0xff] }
  0xe0   :  { %v313_v33 = vld [vmem:[%s828_s3 + $0x70] sm:$0xff]  ;;  %345 = vst.msk [vmem:[%s828_s3 + $0x38] sm:$0xff] %vm18_vm0, %v329_v30  ;;  %v328_v34 = vadd.f32 %v638_v45, %v305_v32 }
  0xe1   :  { %353 = vst.msk [vmem:[%s828_s3 + $0x78] sm:$0xff] %vm18_vm0, %v337_v31  ;;  %v336_v35 = vadd.f32 %v638_v45, %v313_v33 }
  0xe2   :  { %344 = vst.msk [vmem:[%s828_s3 + $0x30] sm:$0xff] %vm18_vm0, %v328_v34 }
  0xe3   :  { %352 = vst.msk [vmem:[%s828_s3 + $0x70] sm:$0xff] %vm18_vm0, %v336_v35 }

</bundles_post_ra>
